<compile_context>
chip_gen: v7x
topology: tpu7x:2x2x1
jax: 0.10.0
libtpu: 0.0.40
codegen_flags: <defaults>
</compile_context>

<pallas_src>
import functools

import jax
import jax.numpy as jnp
from jax.experimental import pallas as pl
from jax.experimental.pallas import tpu as pltpu

_BN_EPS = 1e-5
_LANE = 128
_MAX_TILE_ROWS = 512  # 512-row tiles reach ~85% of HBM roofline on v6e.

_COMPILER_PARAMS = pltpu.CompilerParams(
    dimension_semantics=("parallel",),      # row tiles are independent -> megacore split
    vmem_limit_bytes=64 * 1024 * 1024,      # explicit budget (v7x has 64 MiB physical VMEM)
)


def _round_up(x, m):
    return ((x + m - 1) // m) * m


# ----------------------------- Pallas kernels --------------------------------
def _matmul_stats_kernel(p_ref, w_ref, y_ref, s_ref, ss_ref):
    """Per row-tile: y = p @ w (bf16 in, f32 MXU accumulate) + per-channel sum/sumsq."""
    y = jnp.dot(p_ref[...], w_ref[...], preferred_element_type=jnp.float32)
    y_ref[...] = y
    s_ref[...] = jnp.sum(y, axis=0, keepdims=True).reshape(1, 1, -1)
    ss_ref[...] = jnp.sum(y * y, axis=0, keepdims=True).reshape(1, 1, -1)


def _matmul2_stats_kernel(p_ref, w_ref, q_ref, v_ref,
                          y_ref, s_ref, ss_ref, z_ref, zs_ref, zss_ref):
    """Per row-tile: main 3x3-conv matmul and 1x1 projection-shortcut matmul + stats."""
    y = jnp.dot(p_ref[...], w_ref[...], preferred_element_type=jnp.float32)
    y_ref[...] = y
    s_ref[...] = jnp.sum(y, axis=0, keepdims=True).reshape(1, 1, -1)
    ss_ref[...] = jnp.sum(y * y, axis=0, keepdims=True).reshape(1, 1, -1)
    z = jnp.dot(q_ref[...], v_ref[...], preferred_element_type=jnp.float32)
    z_ref[...] = z
    zs_ref[...] = jnp.sum(z, axis=0, keepdims=True).reshape(1, 1, -1)
    zss_ref[...] = jnp.sum(z * z, axis=0, keepdims=True).reshape(1, 1, -1)


def _bn_relu_kernel(y_ref, sc_ref, sh_ref, o_ref):
    """out = relu(y * scale + shift); output cast to o_ref.dtype (bf16 feeds next conv)."""
    o_ref[...] = jnp.maximum(y_ref[...] * sc_ref[...] + sh_ref[...], 0.0).astype(o_ref.dtype)


def _finalize_kernel(*refs, has_projection, emit_pre):
    """BN2 apply + shortcut add + ReLU; pre-activation emitted only when requested."""
    if has_projection:
        y_ref, z_ref, sc2_ref, sh2_ref, scs_ref, shs_ref = refs[:6]
        rest = refs[6:]
        pre = (y_ref[...] * sc2_ref[...] + sh2_ref[...]
               + z_ref[...] * scs_ref[...] + shs_ref[...])
    else:
        y_ref, r_ref, sc2_ref, sh2_ref = refs[:4]
        rest = refs[4:]
        pre = y_ref[...] * sc2_ref[...] + sh2_ref[...] + r_ref[...]
    if emit_pre:
        o_ref, pre_ref = rest
        pre_ref[...] = pre
    else:
        (o_ref,) = rest
    o_ref[...] = jnp.maximum(pre, 0.0)


# ----------------------------- spec helpers -----------------------------------
def _row_spec(tile_m, ncols):
    return pl.BlockSpec((tile_m, ncols), lambda i: (i, 0))


def _full_spec(shape):
    return pl.BlockSpec(shape, lambda i: (0,) * len(shape))


def _stat_spec(cp):
    return pl.BlockSpec((1, 1, cp), lambda i: (i, 0, 0))


# ----------------------------- pallas_call wrappers ----------------------------
def _conv_stats_call(p, w, tile_m):
    mp, k = p.shape
    cp = w.shape[1]
    nt = mp // tile_m
    return pl.pallas_call(
        _matmul_stats_kernel,
        grid=(nt,),
        in_specs=[_row_spec(tile_m, k), _full_spec((k, cp))],
        out_specs=(_row_spec(tile_m, cp), _stat_spec(cp), _stat_spec(cp)),
        out_shape=(
            jax.ShapeDtypeStruct((mp, cp), jnp.float32),
            jax.ShapeDtypeStruct((nt, 1, cp), jnp.float32),
            jax.ShapeDtypeStruct((nt, 1, cp), jnp.float32),
        ),
        compiler_params=_COMPILER_PARAMS,
    )(p, w)


def _conv_proj_stats_call(p, w, q, v, tile_m):
    mp, k = p.shape
    cp = w.shape[1]
    kq = q.shape[1]
    nt = mp // tile_m
    return pl.pallas_call(
        _matmul2_stats_kernel,
        grid=(nt,),
        in_specs=[_row_spec(tile_m, k), _full_spec((k, cp)),
                  _row_spec(tile_m, kq), _full_spec((kq, cp))],
        out_specs=(_row_spec(tile_m, cp), _stat_spec(cp), _stat_spec(cp),
                   _row_spec(tile_m, cp), _stat_spec(cp), _stat_spec(cp)),
        out_shape=(
            jax.ShapeDtypeStruct((mp, cp), jnp.float32),
            jax.ShapeDtypeStruct((nt, 1, cp), jnp.float32),
            jax.ShapeDtypeStruct((nt, 1, cp), jnp.float32),
            jax.ShapeDtypeStruct((mp, cp), jnp.float32),
            jax.ShapeDtypeStruct((nt, 1, cp), jnp.float32),
            jax.ShapeDtypeStruct((nt, 1, cp), jnp.float32),
        ),
        compiler_params=_COMPILER_PARAMS,
    )(p, w, q, v)


def _bn_relu_call(y, scale, shift, tile_m, out_dtype):
    mp, cp = y.shape
    nt = mp // tile_m
    return pl.pallas_call(
        _bn_relu_kernel,
        grid=(nt,),
        in_specs=[_row_spec(tile_m, cp), _full_spec((1, cp)), _full_spec((1, cp))],
        out_specs=_row_spec(tile_m, cp),
        out_shape=jax.ShapeDtypeStruct((mp, cp), out_dtype),
        compiler_params=_COMPILER_PARAMS,
    )(y, scale, shift)


def _finalize_call(operands, tile_m, has_projection, emit_pre):
    mp, cp = operands[0].shape
    nt = mp // tile_m
    if has_projection:
        in_specs = [_row_spec(tile_m, cp), _row_spec(tile_m, cp),
                    _full_spec((1, cp)), _full_spec((1, cp)),
                    _full_spec((1, cp)), _full_spec((1, cp))]
    else:
        in_specs = [_row_spec(tile_m, cp), _row_spec(tile_m, cp),
                    _full_spec((1, cp)), _full_spec((1, cp))]
    n_out = 2 if emit_pre else 1
    out_specs = tuple(_row_spec(tile_m, cp) for _ in range(n_out))
    out_shape = tuple(jax.ShapeDtypeStruct((mp, cp), jnp.float32) for _ in range(n_out))
    return pl.pallas_call(
        functools.partial(_finalize_kernel,
                          has_projection=has_projection, emit_pre=emit_pre),
        grid=(nt,),
        in_specs=in_specs,
        out_specs=out_specs,
        out_shape=out_shape,
        compiler_params=_COMPILER_PARAMS,
    )(*operands)


# ------------------------------ JAX glue ---------------------------------------
def _im2col(x_nhwc, kh, kw, stride, pad):
    """NHWC -> (N*Ho*Wo, kh*kw*C) patch matrix (rows: n,ho,wo; cols: kh,kw,c)."""
    N, H, W, C = x_nhwc.shape
    Ho = (H + 2 * pad - kh) // stride + 1
    Wo = (W + 2 * pad - kw) // stride + 1
    xp = jnp.pad(x_nhwc, ((0, 0), (pad, pad), (pad, pad), (0, 0)))
    cols = []
    for i in range(kh):
        for j in range(kw):
            cols.append(xp[:, i:i + stride * Ho:stride, j:j + stride * Wo:stride, :])
    patches = jnp.concatenate(cols, axis=-1)
    return patches.reshape(N * Ho * Wo, kh * kw * C), Ho, Wo


def _w_oihw_to_mat(w_oihw):
    """PyTorch (Cout, Cin, KH, KW) -> (KH*KW*Cin, Cout), row order (kh, kw, cin)."""
    cout, cin, kh, kw = w_oihw.shape
    return jnp.transpose(w_oihw, (2, 3, 1, 0)).reshape(kh * kw * cin, cout)


def _pad_rows(a, m_pad):
    m = a.shape[0]
    return a if m == m_pad else jnp.pad(a, ((0, m_pad - m), (0, 0)))


def _pad_cols(a, c_pad):
    c = a.shape[-1]
    return a if c == c_pad else jnp.pad(a, ((0, 0),) * (a.ndim - 1) + ((0, c_pad - c),))


def _pad_vec(v, c_pad):
    c = v.shape[0]
    return v if c == c_pad else jnp.pad(v, (0, c_pad - c))


def _bn_scale_shift(tile_sums, tile_sumsqs, count, gamma, beta, cp):
    """Fold training-mode BatchNorm (biased batch var) into a per-channel affine."""
    s = jnp.sum(tile_sums, axis=(0, 1))
    ss = jnp.sum(tile_sumsqs, axis=(0, 1))
    mu = s / count                      # zero-padded rows contribute 0 to the sums
    var = jnp.maximum(ss / count - mu * mu, 0.0)
    scale = _pad_vec(gamma, cp) * jax.lax.rsqrt(var + _BN_EPS)   # padded channels -> 0
    shift = _pad_vec(beta, cp) - mu * scale
    return scale.reshape(1, cp).astype(jnp.float32), shift.reshape(1, cp).astype(jnp.float32)


class BasicBlockPallas:
    expansion = 1

    def __init__(self, key, in_planes, planes, stride=1, is_last_layer=False,
                 max_tile_rows=_MAX_TILE_ROWS):
        self.in_planes = in_planes
        self.planes = planes
        self.stride = stride
        self.is_last_layer = is_last_layer
        self.max_tile_rows = max_tile_rows
        self.has_projection = (stride != 1) or (in_planes != self.expansion * planes)

        k = jax.random.split(key, 9)
        std1 = 1.0 / jnp.sqrt(in_planes * 9.0)
        std2 = 1.0 / jnp.sqrt(planes * 9.0)
        # conv weights kept in PyTorch OIHW layout; converted to matmul layout in __call__.
        self.w1 = jax.random.normal(k[0], (planes, in_planes, 3, 3), jnp.float32) * std1
        self.w2 = jax.random.normal(k[1], (planes, planes, 3, 3), jnp.float32) * std2
        self.g1 = 1.0 + 0.1 * jax.random.normal(k[2], (planes,), jnp.float32)
        self.b1 = 0.1 * jax.random.normal(k[3], (planes,), jnp.float32)
        self.g2 = 1.0 + 0.1 * jax.random.normal(k[4], (planes,), jnp.float32)
        self.b2 = 0.1 * jax.random.normal(k[5], (planes,), jnp.float32)
        if self.has_projection:
            stds = 1.0 / jnp.sqrt(float(in_planes))
            self.ws = jax.random.normal(k[6], (planes, in_planes, 1, 1), jnp.float32) * stds
            self.gs = 1.0 + 0.1 * jax.random.normal(k[7], (planes,), jnp.float32)
            self.bs = 0.1 * jax.random.normal(k[8], (planes,), jnp.float32)

    def _tile_rows(self, m):
        return min(self.max_tile_rows, _round_up(m, _LANE))

    def __call__(self, x_nchw):
        # NCHW -> NHWC (when stacking blocks, keep NHWC and transpose only at the
        # network boundary).
        x = jnp.transpose(x_nchw, (0, 2, 3, 1)).astype(jnp.float32)
        N, H, W, Cin = x.shape
        planes = self.planes
        cp = _round_up(planes, _LANE)          # lane-dense channel padding
        x_bf = x.astype(jnp.bfloat16)          # bf16 MXU inputs, f32 accumulation

        # ---------------- stage 1: conv1 (3x3, stride) -> BN1 -> ReLU ----------------
        p1, Ho, Wo = _im2col(x_bf, 3, 3, self.stride, 1)
        m1 = N * Ho * Wo
        tile_m = self._tile_rows(m1)
        m1p = _round_up(m1, tile_m)
        p1 = _pad_rows(p1, m1p)                # zero rows: contribute 0 to BN sums
        w1m = _pad_cols(_w_oihw_to_mat(self.w1), cp).astype(jnp.bfloat16)

        y1, s1, ss1 = _conv_stats_call(p1, w1m, tile_m)
        sc1, sh1 = _bn_scale_shift(s1, ss1, m1, self.g1, self.b1, cp)
        out1 = _bn_relu_call(y1, sc1, sh1, tile_m, jnp.bfloat16)      # (m1p, cp) bf16

        out1 = out1[:m1]
        if cp != planes:
            out1 = out1[:, :planes]
        out1_nhwc = out1.reshape(N, Ho, Wo, planes)

        # ------------ stage 2: conv2 (3x3, s=1) -> BN2 -> +shortcut -> ReLU ----------
        p2, Ho2, Wo2 = _im2col(out1_nhwc, 3, 3, 1, 1)
        m2 = N * Ho2 * Wo2
        m2p = _round_up(m2, tile_m)
        p2 = _pad_rows(p2, m2p)
        w2m = _pad_cols(_w_oihw_to_mat(self.w2), cp).astype(jnp.bfloat16)

        emit_pre = self.is_last_layer
        if self.has_projection:
            ps, _, _ = _im2col(x_bf, 1, 1, self.stride, 0)            # 1x1 strided patches
            ps = _pad_rows(ps, m2p)
            wsm = _pad_cols(_w_oihw_to_mat(self.ws), cp).astype(jnp.bfloat16)
            y2, s2, ss2, ysh, ssh, sssh = _conv_proj_stats_call(p2, w2m, ps, wsm, tile_m)
            sc2, sh2 = _bn_scale_shift(s2, ss2, m2, self.g2, self.b2, cp)
            scs, shs = _bn_scale_shift(ssh, sssh, m2, self.gs, self.bs, cp)
            operands = (y2, ysh, sc2, sh2, scs, shs)
        else:
            y2, s2, ss2 = _conv_stats_call(p2, w2m, tile_m)
            sc2, sh2 = _bn_scale_shift(s2, ss2, m2, self.g2, self.b2, cp)
            # identity residual stays f32, padded to the lane-dense channel count
            res = _pad_rows(_pad_cols(x.reshape(N * H * W, Cin), cp), m2p)
            operands = (y2, res, sc2, sh2)

        outs = _finalize_call(operands, tile_m, self.has_projection, emit_pre)
        out2 = outs[0][:m2, :planes].reshape(N, Ho2, Wo2, planes)
        out_nchw = jnp.transpose(out2, (0, 3, 1, 2))
        if emit_pre:
            pre = outs[1][:m2, :planes].reshape(N, Ho2, Wo2, planes)
            return out_nchw, jnp.transpose(pre, (0, 3, 1, 2))
        return out_nchw


# ------------------------------ reference (pure JAX) ---------------------------
def _ref_forward(block, x_nchw, bf16_inputs=False):
    """f32 XLA reference; bf16_inputs=True rounds conv inputs like the Pallas path."""
    def cast(a):
        return a.astype(jnp.bfloat16).astype(jnp.float32) if bf16_inputs else a

    x = jnp.transpose(x_nchw, (0, 2, 3, 1)).astype(jnp.float32)

    def conv(xin, w_oihw, stride, pad):
        w = jnp.transpose(w_oihw, (2, 3, 1, 0))
        return jax.lax.conv_general_dilated(
            cast(xin), cast(w), (stride, stride), [(pad, pad), (pad, pad)],
            dimension_numbers=("NHWC", "HWIO", "NHWC"),
            precision=jax.lax.Precision.HIGHEST)

    def bn(y, g, b):
        mu = jnp.mean(y, axis=(0, 1, 2), keepdims=True)
        var = jnp.mean(jnp.square(y - mu), axis=(0, 1, 2), keepdims=True)
        return (y - mu) * jax.lax.rsqrt(var + _BN_EPS) * g + b

    o = jax.nn.relu(bn(conv(x, block.w1, block.stride, 1), block.g1, block.b1))
    if bf16_inputs:
        o = o.astype(jnp.bfloat16).astype(jnp.float32)   # kernel stores out1 in bf16
    o = bn(conv(o, block.w2, 1, 1), block.g2, block.b2)
    if block.has_projection:
        s = bn(conv(x, block.ws, block.stride, 0), block.gs, block.bs)
    else:
        s = x
    pre = o + s
    out = jax.nn.relu(pre)
    return jnp.transpose(out, (0, 3, 1, 2)), jnp.transpose(pre, (0, 3, 1, 2))


if __name__ == "__main__":
    key = jax.random.PRNGKey(0)
    kp, kx = jax.random.split(key)

    # Case 1: projection shortcut (stride=2, channel change), is_last_layer=True.
    N, in_planes, H, W, planes = 2, 4, 16, 16, 8
    block = BasicBlockPallas(kp, in_planes, planes, stride=2, is_last_layer=True)
    x = jax.random.normal(kx, (N, in_planes, H, W), jnp.float32)
    out, pre = block(x)
    jax.block_until_ready((out, pre))
    assert out.shape == (N, planes, H // 2, W // 2)

    # Tight check vs a reference that rounds conv inputs to bf16 exactly like the kernel.
    ref_o_t, ref_p_t = _ref_forward(block, x, bf16_inputs=True)
    assert jnp.allclose(out, ref_o_t, atol=2e-3, rtol=2e-3), "proj output mismatch (tight)"
    assert jnp.allclose(pre, ref_p_t, atol=2e-3, rtol=2e-3), "proj preact mismatch (tight)"
    # Loose check vs the full-f32 reference (bf16 MXU inputs trade a little accuracy).
    ref_o_f, ref_p_f = _ref_forward(block, x, bf16_inputs=False)
    assert jnp.allclose(out, ref_o_f, atol=5e-2, rtol=5e-2), "proj output mismatch (f32 ref)"
    assert jnp.allclose(pre, ref_p_f, atol=5e-2, rtol=5e-2), "proj preact mismatch (f32 ref)"

    # Case 2: identity shortcut (stride=1, in_planes == planes); small max_tile_rows so
    # the grid has several row tiles (exercises tiled per-tile stats + parallel grid).
    block2 = BasicBlockPallas(jax.random.fold_in(kp, 1), 8, 8, stride=1,
                              is_last_layer=False, max_tile_rows=128)
    x2 = jax.random.normal(jax.random.fold_in(kx, 1), (N, 8, H, W), jnp.float32)
    out2 = block2(x2)
    jax.block_until_ready(out2)
    assert out2.shape == (N, 8, H, W)
    ref2_t, _ = _ref_forward(block2, x2, bf16_inputs=True)
    assert jnp.allclose(out2, ref2_t, atol=2e-3, rtol=2e-3), "identity output mismatch (tight)"
    ref2_f, _ = _ref_forward(block2, x2, bf16_inputs=False)
    assert jnp.allclose(out2, ref2_f, atol=5e-2, rtol=5e-2), "identity output mismatch (f32 ref)"

    print("KERNEL_OK")
</pallas_src>

<mosaic_0001>
module attributes {stable_mosaic.version = 11 : i64} {
  func.func @_matmul_stats_kernel(%arg0: i32, %arg1: memref<128x36xbf16, #tpu.memory_space<vmem>>, %arg2: memref<36x128xbf16, #tpu.memory_space<vmem>>, %arg3: memref<128x128xf32, #tpu.memory_space<vmem>>, %arg4: memref<1x1x128xf32, #tpu.memory_space<vmem>>, %arg5: memref<1x1x128xf32, #tpu.memory_space<vmem>>) attributes {dimension_semantics = [#tpu.dimension_semantics<parallel>], iteration_bounds = array<i64: 1>, scalar_prefetch = 0 : i64, scratch_operands = 0 : i64, tpu.core_type = #tpu.core_type<tc>, window_params = [{transform_indices = @transform_0, window_bounds = array<i64: 128, 36>}, {pipeline_mode = #tpu.pipeline_mode<synchronous>, transform_indices = @transform_1, window_bounds = array<i64: 36, 128>}, {transform_indices = @transform_2, window_bounds = array<i64: 128, 128>}, {transform_indices = @transform_3, window_bounds = array<i64: 1, 1, 128>}, {transform_indices = @transform_4, window_bounds = array<i64: 1, 1, 128>}]} {
    %c0 = arith.constant 0 : index
    %c0_0 = arith.constant 0 : index
    %0 = vector.load %arg1[%c0, %c0_0] : memref<128x36xbf16, #tpu.memory_space<vmem>>, vector<128x36xbf16>
    %c0_1 = arith.constant 0 : index
    %c0_2 = arith.constant 0 : index
    %1 = vector.load %arg2[%c0_1, %c0_2] : memref<36x128xbf16, #tpu.memory_space<vmem>>, vector<36x128xbf16>
    %cst = arith.constant dense<0.000000e+00> : vector<128x128xf32>
    %2 = tpu.matmul %0, %1, %cst {dimension_numbers = #tpu.dot_dimension_numbers<[1], [0], [0], [1], [0, 0, 1, 1], [], []>} : vector<128x36xbf16>, vector<36x128xbf16>, vector<128x128xf32> -> vector<128x128xf32>
    %c0_3 = arith.constant 0 : index
    %c0_4 = arith.constant 0 : index
    %3 = vector.load %arg3[%c0_3, %c0_4] : memref<128x128xf32, #tpu.memory_space<vmem>>, vector<128x128xf32>
    tpu.vector_store %arg3[%c0_3, %c0_4], %2 {strides = array<i32>} : memref<128x128xf32, #tpu.memory_space<vmem>>, vector<128x128xf32>,
    %cst_5 = arith.constant dense<0.000000e+00> : vector<128xf32>
    %4 = vector.multi_reduction <add>, %2, %cst_5 [0] : vector<128x128xf32> to vector<128xf32>
    %5 = vector.shape_cast %4 : vector<128xf32> to vector<1x128xf32>
    %6 = vector.shape_cast %5 : vector<1x128xf32> to vector<1x1x128xf32>
    %c0_6 = arith.constant 0 : index
    %c0_7 = arith.constant 0 : index
    %c0_8 = arith.constant 0 : index
    %7 = vector.load %arg4[%c0_6, %c0_7, %c0_8] : memref<1x1x128xf32, #tpu.memory_space<vmem>>, vector<1x1x128xf32>
    tpu.vector_store %arg4[%c0_6, %c0_7, %c0_8], %6 {strides = array<i32>} : memref<1x1x128xf32, #tpu.memory_space<vmem>>, vector<1x1x128xf32>,
    %8 = arith.mulf %2, %2 : vector<128x128xf32>
    %cst_9 = arith.constant dense<0.000000e+00> : vector<128xf32>
    %9 = vector.multi_reduction <add>, %8, %cst_9 [0] : vector<128x128xf32> to vector<128xf32>
    %10 = vector.shape_cast %9 : vector<128xf32> to vector<1x128xf32>
    %11 = vector.shape_cast %10 : vector<1x128xf32> to vector<1x1x128xf32>
    %c0_10 = arith.constant 0 : index
    %c0_11 = arith.constant 0 : index
    %c0_12 = arith.constant 0 : index
    %12 = vector.load %arg5[%c0_10, %c0_11, %c0_12] : memref<1x1x128xf32, #tpu.memory_space<vmem>>, vector<1x1x128xf32>
    tpu.vector_store %arg5[%c0_10, %c0_11, %c0_12], %11 {strides = array<i32>} : memref<1x1x128xf32, #tpu.memory_space<vmem>>, vector<1x1x128xf32>,
    return
  }
  func.func @transform_0(%arg0: i32) -> (i32, i32) {
    %c0_i32 = arith.constant 0 : i32
    %c0_i32_0 = arith.constant 0 : i32
    return %arg0, %c0_i32 : i32, i32
  }
  func.func @transform_1(%arg0: i32) -> (i32, i32) {
    %c0_i32 = arith.constant 0 : i32
    %c0_i32_0 = arith.constant 0 : i32
    %c0_i32_1 = arith.constant 0 : i32
    return %c0_i32, %c0_i32_0 : i32, i32
  }
  func.func @transform_2(%arg0: i32) -> (i32, i32) {
    %c0_i32 = arith.constant 0 : i32
    %c0_i32_0 = arith.constant 0 : i32
    return %arg0, %c0_i32 : i32, i32
  }
  func.func @transform_3(%arg0: i32) -> (i32, i32, i32) {
    %c0_i32 = arith.constant 0 : i32
    %c0_i32_0 = arith.constant 0 : i32
    %c0_i32_1 = arith.constant 0 : i32
    return %arg0, %c0_i32, %c0_i32_0 : i32, i32, i32
  }
  func.func @transform_4(%arg0: i32) -> (i32, i32, i32) {
    %c0_i32 = arith.constant 0 : i32
    %c0_i32_0 = arith.constant 0 : i32
    %c0_i32_1 = arith.constant 0 : i32
    return %arg0, %c0_i32, %c0_i32_0 : i32, i32, i32
  }
}

</mosaic_0001>

<bundles_post_ra>
// kernel: tpu_custom_call.1
= control target key start
LH: loop header
LB: loop body
LE: loop exit
PB: predicated region body
PF: predicated region fallthrough
CT: control target
= control target key end

     0   :  { %10 = vsyncpa [#allocation3], 0  ;;  %s701_s0 = inlined_call_operand.hbm [shape: bf16[128,36], index: 0, kind: input, shape index: {}]   ;;  %s702_s1 = inlined_call_operand.hbm [shape: bf16[36,128], index: 1, kind: input, shape index: {}]   ;;  %s703_s2 = inlined_call_operand.hbm [shape: f32[128,128], index: 2, kind: output, shape index: {0}]   ;;  %s704_s3 = inlined_call_operand.hbm [shape: f32[1,1,128], index: 3, kind: output, shape index: {1}]   ;;  %s705_s4 = inlined_call_operand.hbm [shape: f32[1,1,128], index: 4, kind: output, shape index: {2}]  }
   0x1   :  { %11 = vsyncpa [#allocation6], 0 }
   0x2   :  { %12 = vsyncpa [#allocation4], 0 }
   0x3   :  { %13 = vsyncpa [#allocation9], 0  ;;  %s566_s15 = smov [#allocation2]   ;;  %s448_s19 = scalar_lea.hbm %s701_s0, 1024 }
   0x4   :  { %s19_s16 = sshll.u32 %s566_s15, 4  ;;  %p449_p0 = scmp.ne.s32.totalorder %s701_s0, %s448_s19  ;;  %s20_s16 = int_to_ptr.vmem [resolvable:$true] %s19_s16 }
   0x5   :  { %p452_p1 = scmp.lt.u32.totalorder %s448_s19, %s701_s0 }
   0x7   :  { %p454_p2 = pnand %p452_p1, %p449_p0 }
   0x9   :  { %457 = shalt.err (!%p454_p2)
}
   0xa   :  { %s458_s24 = scalar_lea.vmem %s20_s16, 1024  ;;  %p463_p4 = scmp.lt.s32.totalorder %s20_s16, %s20_s16 }
   0xb   :  { %p459_p3 = scmp.ne.s32.totalorder %s20_s16, %s458_s24  ;;  %p464_p5 = scmp.lt.s32.totalorder %s458_s24, %s458_s24 }
   0xd   :  { %p465_p6 = por %p464_p5, %p463_p4 }
   0xf   :  { %p466_p7 = pnand %p465_p6, %p459_p3 }
  0x11   :  { %469 = shalt.err (!%p466_p7)
}
  0x12   :  { %s567_s25 = smov 64   ;;  %s568_s26 = smov 4  }
  0x13   :  { %25 = dma.hbm_to_vmem [thread:$0]  %s701_s0, 1024, %s20_s16, [#allocation3], %s567_s25, %s567_s25, %s568_s26  }
  0x14   :  { %s569_s29 = smov [#allocation5]   ;;  %s470_s7 = scalar_lea.hbm %s702_s1, 320 }
  0x15   :  { %s31_s30 = sshll.u32 %s569_s29, 4  ;;  %p471_p8 = scmp.ne.s32.totalorder %s702_s1, %s470_s7  ;;  %s32_s30 = int_to_ptr.vmem [resolvable:$true] %s31_s30 }
  0x16   :  { %p474_p9 = scmp.lt.u32.totalorder %s470_s7, %s702_s1 }
  0x18   :  { %p476_p10 = pnand %p474_p9, %p471_p8 }
  0x1a   :  { %479 = shalt.err (!%p476_p10)
}
  0x1b   :  { %s480_s12 = scalar_lea.vmem %s32_s30, 320  ;;  %p485_p12 = scmp.lt.s32.totalorder %s32_s30, %s32_s30 }
  0x1c   :  { %p481_p11 = scmp.ne.s32.totalorder %s32_s30, %s480_s12  ;;  %p486_p13 = scmp.lt.s32.totalorder %s480_s12, %s480_s12 }
  0x1e   :  { %p487_p0 = por %p486_p13, %p485_p12 }
  0x20   :  { %p488_p1 = pnand %p487_p0, %p481_p11 }
  0x22   :  { %491 = shalt.err (!%p488_p1)
}
  0x23   :  { %37 = dma.hbm_to_vmem [thread:$0]  %s702_s1, 320, %s32_s30, [#allocation6], %s567_s25, %s567_s25, %s568_s26  }
  0x24   :  { %558 = dma.done.wait [#allocation3], 1024  }
  0x25   :  { %559 = vsyncadd [#allocation3], 4294966272 }
  0x26   :  { %560 = dma.done.wait [#allocation6], 320  }
  0x27   :  { %561 = vsyncadd [#allocation6], 4294966976  ;;  %v437_v0 = vld [vmem:[#allocation5] sm:$0xff]   ;;  %v438_v1 = vld [vmem:[#allocation5 + $0x8] sm:$0xff]   ;;  %vm121_vm0 = vcmask 293888   ;;  %vm146_vm1 = vcmask 1041408  }
  0x28   :  { %398 = vmatprep.subr.bf16.mxu0 %v437_v0  ;;  %v439_v2 = vld [vmem:[#allocation5 + $0x10] ss:$0 sps:$4 sm:$0x33]   ;;  %v440_v3 = vld [vmem:[#allocation2] sm:$0xff]   ;;  %420 = vmatprep.subr.bf16.mxu1 %v437_v0  ;;  %v441_v6 = vld [vmem:[#allocation2 + $0x8] sm:$0xff]   ;;  %s570_s1 = smov [#allocation7]  }
  0x29   :  { %399 = vmatpush3.bf16.msra.mxu0 %v437_v0  ;;  %423 = vmatpush3.bf16.msra.mxu1 %v437_v0  ;;  %v444_v4 = vld [vmem:[#allocation2 + $0x20] sm:$0xff]   ;;  %v148_v5 = vsel %vm146_vm1, %v439_v2, 0  ;;  %v445_v7 = vld [vmem:[#allocation2 + $0x28] sm:$0xff]   ;;  %v442_v8 = vld [vmem:[#allocation2 + $0x10] sm:$0xff]   ;;  %s328_s14 = sshll.u32 %s570_s1, 4  ;;  %s641_s14 = int_to_ptr.vmem [resolvable:$true] %s328_s14 }
  0x2a   :  { %400 = vmatprep.subr.bf16.mxu0 %v438_v1  ;;  %404 = vmatprep.mubr.msk.bf16.mxu0 %vm121_vm0, %v440_v3  ;;  %v446_v9 = vld [vmem:[#allocation2 + $0x30] sm:$0xff]   ;;  %v443_v10 = vld [vmem:[#allocation2 + $0x18] sm:$0xff]   ;;  %s492_s15 = scalar_lea.vmem %s641_s14, 2048  ;;  %p497_p3 = scmp.lt.s32.totalorder %s641_s14, %s641_s14 }
  0x2b   :  { %421 = vmatprep.subr.bf16.mxu1 %v438_v1  ;;  %412 = vmatprep.mubr.msk.bf16.mxu1 %vm121_vm0, %v444_v4  ;;  %v447_v11 = vld [vmem:[#allocation2 + $0x38] sm:$0xff]   ;;  %p493_p2 = scmp.ne.s32.totalorder %s641_s14, %s492_s15  ;;  %p498_p4 = scmp.lt.s32.totalorder %s492_s15, %s492_s15 }
  0x2d   :  { %401 = vmatpush3.bf16.msra.mxu0 %v438_v1  ;;  %424 = vmatpush3.bf16.msra.mxu1 %v438_v1  ;;  %p499_p5 = por %p498_p4, %p497_p3 }
  0x2e   :  { %426 = vmatprep.subr.msk.bf16.mxu0 %vm146_vm1, %v439_v2  ;;  %427 = vmatprep.subr.msk.bf16.mxu1 %vm146_vm1, %v439_v2 }
  0x2f   :  { %p500_p6 = pnand %p499_p5, %p493_p2 }
  0x31   :  { %403 = vmatpush3.bf16.msra.mxu0 %v148_v5  ;;  %425 = vmatpush3.bf16.msra.mxu1 %v148_v5 }
  0x34   :  { %405 = vmatmul.mubr.msk.bf16.vlgmr.msra.gmra.mrb[0].mxu0 %vm121_vm0, %v441_v6  ;;  %413 = vmatmul.mubr.msk.bf16.vlgmr.msra.gmra.mrb[0].mxu1 %vm121_vm0, %v445_v7 }
  0x35   :  { %408 = vmatprep.mubr.msk.bf16.mxu0 %vm121_vm0, %v442_v8  ;;  %416 = vmatprep.mubr.msk.bf16.mxu1 %vm121_vm0, %v446_v9 }
  0x3c   :  { %409 = vmatmul.mubr.msk.bf16.gmra.mrb[4].mxu0 %vm121_vm0, %v443_v10  ;;  %417 = vmatmul.mubr.msk.bf16.gmra.mrb[4].mxu1 %vm121_vm0, %v447_v11 }
 0x107   :  { %v406_v12 = vpop.f32.mrb[0].mxu0  ;;  %v632_v13 = vpop.f32.mrb[0].mxu1 }
 0x108   :  { %249 = vst [vmem:[#allocation7 + $0x10] sm:$0xff] %v406_v12  ;;  %v184_v14 = vpop.f32.mrb[1].mxu0  ;;  %257 = vst [vmem:[#allocation7 + $0x50] sm:$0xff] %v632_v13  ;;  %v635_v15 = vpop.f32.mrb[1].mxu1  ;;  %v287_v23 = vmul.f32 %v406_v12, %v406_v12 }
 0x109   :  { %247 = vst [vmem:[#allocation7] sm:$0xff] %v184_v14  ;;  %v407_v16 = vpop.f32.mrb[2].mxu0  ;;  %255 = vst [vmem:[#allocation7 + $0x40] sm:$0xff] %v635_v15  ;;  %v638_v17 = vpop.f32.mrb[2].mxu1  ;;  %v285_v20 = vmul.f32 %v184_v14, %v184_v14 }
 0x10a   :  { %250 = vst [vmem:[#allocation7 + $0x18] sm:$0xff] %v407_v16  ;;  %v187_v18 = vpop.f32.mrb[3].mxu0  ;;  %258 = vst [vmem:[#allocation7 + $0x58] sm:$0xff] %v638_v17  ;;  %v219_v19 = vpop.f32.mrb[3].mxu1  ;;  %v288_v26 = vmul.f32 %v407_v16, %v407_v16 }
 0x10b   :  { %248 = vst [vmem:[#allocation7 + $0x8] sm:$0xff] %v187_v18  ;;  %v263_v21 = vadd.f32 %v187_v18, %v184_v14  ;;  %v286_v22 = vmul.f32 %v187_v18, %v187_v18  ;;  %256 = vst [vmem:[#allocation7 + $0x48] sm:$0xff] %v219_v19 }
 0x10d   :  { %v264_v24 = vadd.f32 %v406_v12, %v263_v21  ;;  %v301_v25 = vadd.f32 %v286_v22, %v285_v20 }
 0x10f   :  { %v302_v27 = vadd.f32 %v301_v25, %v287_v23  ;;  %v410_v28 = vpop.f32.mrb[4].mxu0  ;;  %v265_v29 = vadd.f32 %v407_v16, %v264_v24  ;;  %v418_v30 = vpop.f32.mrb[4].mxu1 }
 0x110   :  { %253 = vst [vmem:[#allocation7 + $0x30] sm:$0xff] %v410_v28  ;;  %v200_v31 = vpop.f32.mrb[5].mxu0  ;;  %261 = vst [vmem:[#allocation7 + $0x70] sm:$0xff] %v418_v30  ;;  %v232_v32 = vpop.f32.mrb[5].mxu1 }
 0x111   :  { %251 = vst [vmem:[#allocation7 + $0x20] sm:$0xff] %v200_v31  ;;  %v266_v33 = vadd.f32 %v265_v29, %v200_v31  ;;  %v289_v34 = vmul.f32 %v200_v31, %v200_v31  ;;  %v303_v35 = vadd.f32 %v302_v27, %v288_v26  ;;  %v411_v36 = vpop.f32.mrb[6].mxu0  ;;  %259 = vst [vmem:[#allocation7 + $0x60] sm:$0xff] %v232_v32  ;;  %v419_v37 = vpop.f32.mrb[6].mxu1 }
 0x112   :  { %254 = vst [vmem:[#allocation7 + $0x38] sm:$0xff] %v411_v36  ;;  %v203_v38 = vpop.f32.mrb[7].mxu0  ;;  %262 = vst [vmem:[#allocation7 + $0x78] sm:$0xff] %v419_v37  ;;  %v235_v39 = vpop.f32.mrb[7].mxu1 }
 0x113   :  { %v304_v40 = vadd.f32 %v303_v35, %v289_v34  ;;  %252 = vst [vmem:[#allocation7 + $0x28] sm:$0xff] %v203_v38  ;;  %v267_v41 = vadd.f32 %v266_v33, %v203_v38  ;;  %v290_v42 = vmul.f32 %v203_v38, %v203_v38  ;;  %260 = vst [vmem:[#allocation7 + $0x68] sm:$0xff] %v235_v39 }
 0x114   :  { %503 = shalt.err (!%p500_p6)
}
 0x115   :  { %s504_s18 = scalar_lea.hbm %s703_s2, 2048 }
 0x116   :  { %p505_p7 = scmp.ne.s32.totalorder %s703_s2, %s504_s18  ;;  %p508_p8 = scmp.lt.u32.totalorder %s504_s18, %s703_s2 }
 0x118   :  { %p510_p9 = pnand %p508_p8, %p505_p7 }
 0x11a   :  { %513 = shalt.err (!%p510_p9)
}
 0x11b   :  { %s571_s23 = smov 128   ;;  %s572_s24 = smov 8   ;;  %v291_v43 = vmul.f32 %v410_v28, %v410_v28  ;;  %v268_v44 = vadd.f32 %v410_v28, %v267_v41  ;;  %v305_v45 = vadd.f32 %v304_v40, %v290_v42  ;;  %v292_v46 = vmul.f32 %v411_v36, %v411_v36 }
 0x11c   :  { %334 = dma.vmem_to_hbm [thread:$0]  %s641_s14, 2048, %s703_s2, [#allocation4], %s571_s23, %s571_s23, %s572_s24   ;;  %v293_v49 = vmul.f32 %v635_v15, %v635_v15  ;;  %v294_v54 = vmul.f32 %v219_v19, %v219_v19  ;;  %v295_v55 = vmul.f32 %v632_v13, %v632_v13  ;;  %v296_v58 = vmul.f32 %v638_v17, %v638_v17 }
 0x11d   :  { %v306_v47 = vadd.f32 %v305_v45, %v291_v43  ;;  %v269_v48 = vadd.f32 %v411_v36, %v268_v44  ;;  %v297_v61 = vmul.f32 %v232_v32, %v232_v32  ;;  %v298_v2 = vmul.f32 %v235_v39, %v235_v39  ;;  %s573_s2 = smov [#allocation8]   ;;  %s574_s28 = smov [#allocation10]  }
 0x11e   :  { %v299_v3 = vmul.f32 %v418_v30, %v418_v30  ;;  %v300_v6 = vmul.f32 %v419_v37, %v419_v37  ;;  %s341_s27 = sshll.u32 %s573_s2, 4  ;;  %s351_s29 = sshll.u32 %s574_s28, 4  ;;  %s342_s27 = int_to_ptr.vmem [resolvable:$true] %s341_s27  ;;  %s669_s29 = int_to_ptr.vmem [resolvable:$true] %s351_s29 }
 0x11f   :  { %v270_v50 = vadd.f32 %v269_v48, %v635_v15  ;;  %v307_v51 = vadd.f32 %v306_v47, %v292_v46  ;;  %s514_s30 = scalar_lea.vmem %s342_s27, 16  ;;  %s518_s5 = scalar_lea.vmem %s342_s27, 32 }
 0x120   :  { %p515_p10 = scmp.ne.s32.totalorder %s342_s27, %s514_s30  ;;  %p519_p11 = scmp.lt.s32.totalorder %s342_s27, %s342_s27 }
 0x121   :  { %v308_v52 = vadd.f32 %v307_v51, %v293_v49  ;;  %v271_v53 = vadd.f32 %v270_v50, %v219_v19  ;;  %p520_p12 = scmp.lt.s32.totalorder %s518_s5, %s514_s30 }
 0x123   :  { %v272_v56 = vadd.f32 %v632_v13, %v271_v53  ;;  %v309_v57 = vadd.f32 %v308_v52, %v294_v54  ;;  %p521_p13 = por %p520_p12, %p519_p11 }
 0x125   :  { %v310_v59 = vadd.f32 %v309_v57, %v295_v55  ;;  %v273_v60 = vadd.f32 %v638_v17, %v272_v56  ;;  %p522_p0 = pnand %p521_p13, %p515_p10 }
 0x127   :  { %v274_v62 = vadd.f32 %v273_v60, %v232_v32  ;;  %v311_v63 = vadd.f32 %v310_v59, %v296_v58 }
 0x129   :  { %v312_v0 = vadd.f32 %v311_v63, %v297_v61  ;;  %v275_v1 = vadd.f32 %v274_v62, %v235_v39 }
 0x12b   :  { %v276_v4 = vadd.f32 %v418_v30, %v275_v1  ;;  %v313_v5 = vadd.f32 %v312_v0, %v298_v2 }
 0x12d   :  { %v277_v7 = vadd.f32 %v419_v37, %v276_v4  ;;  %v314_v8 = vadd.f32 %v313_v5, %v299_v3 }
 0x12f   :  { %v278_v9 = vrot.slane %v277_v7, 4  ;;  %v315_v10 = vadd.f32 %v314_v8, %v300_v6 }
 0x131   :  { %v316_v11 = vrot.slane %v315_v10, 4  ;;  %v279_v12 = vadd.f32 %v278_v9, %v277_v7 }
 0x133   :  { %v280_v13 = vrot.slane %v279_v12, 2  ;;  %v317_v14 = vadd.f32 %v316_v11, %v315_v10 }
 0x135   :  { %v281_v15 = vadd.f32 %v280_v13, %v279_v12  ;;  %v318_v16 = vrot.slane %v317_v14, 2 }
 0x137   :  { %v282_v17 = vrot.slane %v281_v15, 1  ;;  %v319_v18 = vadd.f32 %v318_v16, %v317_v14 }
 0x139   :  { %v283_v19 = vadd.f32 %v282_v17, %v281_v15  ;;  %v320_v20 = vrot.slane %v319_v18, 1 }
 0x13b   :  { %284 = vst [vmem:[#allocation8] sm:$0x1] %v283_v19  ;;  %v321_v21 = vadd.f32 %v320_v20, %v319_v18 }
 0x13c   :  { %525 = shalt.err (!%p522_p0)
}
 0x13d   :  { %s526_s8 = scalar_lea.hbm %s704_s3, 16 }
 0x13e   :  { %p527_p1 = scmp.ne.s32.totalorder %s704_s3, %s526_s8  ;;  %p530_p2 = scmp.lt.u32.totalorder %s526_s8, %s704_s3 }
 0x140   :  { %p532_p3 = pnand %p530_p2, %p527_p1 }
 0x142   :  { %535 = shalt.err (!%p532_p3)
}
 0x143   :  { %344 = dma.vmem_to_hbm [thread:$0]  %s342_s27, 16, %s704_s3, [#allocation9]   ;;  %322 = vst [vmem:[#allocation10] sm:$0x1] %v321_v21 }
 0x144   :  { %s536_s1 = scalar_lea.vmem %s669_s29, 16  ;;  %s540_s14 = scalar_lea.vmem %s669_s29, 32 }
 0x145   :  { %p537_p4 = scmp.ne.s32.totalorder %s669_s29, %s536_s1  ;;  %p541_p5 = scmp.lt.s32.totalorder %s669_s29, %s669_s29 }
 0x146   :  { %p542_p6 = scmp.lt.s32.totalorder %s540_s14, %s536_s1 }
 0x148   :  { %p543_p7 = por %p542_p6, %p541_p5 }
 0x14a   :  { %p544_p8 = pnand %p543_p7, %p537_p4 }
 0x14c   :  { %547 = shalt.err (!%p544_p8)
}
 0x14d   :  { %s548_s17 = scalar_lea.hbm %s705_s4, 16 }
 0x14e   :  { %p549_p9 = scmp.ne.s32.totalorder %s705_s4, %s548_s17  ;;  %p552_p10 = scmp.lt.u32.totalorder %s548_s17, %s705_s4 }
 0x150   :  { %p554_p11 = pnand %p552_p10, %p549_p9 }
 0x152   :  { %557 = shalt.err (!%p554_p11)
}
 0x153   :  { %354 = dma.vmem_to_hbm [thread:$0]  %s669_s29, 16, %s705_s4, [#allocation9]  }
 0x154   :  { %562 = dma.done.wait [#allocation4], 2048  }
 0x155   :  { %563 = vsyncadd [#allocation4], 4294965248 }
 0x156   :  { %564 = dma.done.wait [#allocation9], 32  }
 0x157   :  { %565 = vsyncadd [#allocation9], 4294967264 }
 0x158   :  { %364 = vsyncpa [#allocation3], 1 }
 0x159   :  { %365 = vsyncpa [#allocation6], 1 }
 0x15a   :  { %366 = vsyncpa [#allocation4], 1 }
 0x15b   :  { %367 = vsyncpa [#allocation9], 1 }

</bundles_post_ra>
